<compile_context>
chip_gen: v7x
topology: tpu7x:2x2x1
jax: 0.10.0
libtpu: 0.0.40
codegen_flags: <defaults>
</compile_context>

<pallas_src>
import functools

import jax
import jax.numpy as jnp
from jax.experimental import pallas as pl
from jax.experimental.pallas import tpu as pltpu


def _round_up(n, m):
    return ((n + m - 1) // m) * m


def _pad2(a, rows, cols):
    return jnp.pad(a, ((0, rows - a.shape[0]), (0, cols - a.shape[1])))


# ----------------------------------------------------------------------------
# Pallas kernel: fused VAE forward for one batch tile (num_layers == 1).
# ----------------------------------------------------------------------------
def _vae_kernel(
    x_ref, eps_ref,
    w1_ref, b1_ref,        # encoder[0]            : [Dp, Hp]  bf16, [1, Hp]   f32
    wh_ref, bh_ref,        # fused fc21|fc22 head  : [Hp, 2Zp] bf16, [1, 2Zp]  f32
    w3_ref, b3_ref,        # decoder[0]            : [Zp, Hp]  bf16, [1, Hp]   f32
    w4_ref, b4_ref,        # fc4                   : [Hp, Dp]  bf16, [1, Dp]   f32
    out_ref,               # packed output slab    : [TB, Dp + 3*Zp] f32
    *, d_pad, z_pad,
):
    bf16 = jnp.bfloat16

    # ---- encode ----
    h = jnp.dot(x_ref[...], w1_ref[...],
                preferred_element_type=jnp.float32) + b1_ref[...]
    h = jnp.maximum(h, 0.0)                                   # ReLU (VPU, f32)

    # fused mu|logvar head: one MXU matmul of width 2*Zp
    head = jnp.dot(h.astype(bf16), wh_ref[...],
                   preferred_element_type=jnp.float32) + bh_ref[...]
    mu = head[:, :z_pad]
    logvar = head[:, z_pad:]

    # ---- reparameterize (f32 throughout) ----
    std = jnp.exp(0.5 * logvar)                               # EUP
    z = mu + eps_ref[...] * std

    # ---- decode ----
    h2 = jnp.dot(z.astype(bf16), w3_ref[...],
                 preferred_element_type=jnp.float32) + b3_ref[...]
    h2 = jnp.maximum(h2, 0.0)
    x_hat = jnp.dot(h2.astype(bf16), w4_ref[...],
                    preferred_element_type=jnp.float32) + b4_ref[...]

    # ---- single lane-dense packed output slab (all slices 128-aligned) ----
    out_ref[:, 0:d_pad] = x_hat.astype(out_ref.dtype)
    out_ref[:, d_pad:d_pad + z_pad] = mu.astype(out_ref.dtype)
    out_ref[:, d_pad + z_pad:d_pad + 2 * z_pad] = logvar.astype(out_ref.dtype)
    out_ref[:, d_pad + 2 * z_pad:d_pad + 3 * z_pad] = z.astype(out_ref.dtype)


@functools.partial(jax.jit, static_argnames=("block_b",))
def vae_forward(x, eps, params, block_b=256):
    """Fused VAE forward. x: [B, D_in] f32, eps: [B, Z] f32."""
    B, D = x.shape
    Z = eps.shape[1]
    H = params["w1"].shape[1]

    Dp = _round_up(D, 128)
    Hp = _round_up(H, 128)
    Zp = _round_up(Z, 128)

    # Batch tile: multiple of 8 sublanes, capped at block_b (keeps per-tile
    # VMEM footprint modest enough for v7x's 64 MiB VMEM too).
    assert block_b % 8 == 0
    TB = min(block_b, _round_up(B, 8))
    Bp = _round_up(B, TB)
    nb = Bp // TB
    Wout = Dp + 3 * Zp

    bf16 = jnp.bfloat16
    f32 = jnp.float32

    # ---- pad + cast operands (tiny one-time XLA ops outside the kernel) ----
    xp = _pad2(x, Bp, Dp).astype(bf16)
    ep = _pad2(eps, Bp, Zp).astype(f32)

    w1 = _pad2(params["w1"], Dp, Hp).astype(bf16)
    b1 = _pad2(params["b1"], 1, Hp).astype(f32)
    # fuse fc21 | fc22 into one [Hp, 2*Zp] head
    wh = jnp.concatenate(
        [_pad2(params["w21"], Hp, Zp), _pad2(params["w22"], Hp, Zp)], axis=1
    ).astype(bf16)
    bh = jnp.concatenate(
        [_pad2(params["b21"], 1, Zp), _pad2(params["b22"], 1, Zp)], axis=1
    ).astype(f32)
    w3 = _pad2(params["w3"], Zp, Hp).astype(bf16)
    b3 = _pad2(params["b3"], 1, Hp).astype(f32)
    w4 = _pad2(params["w4"], Hp, Dp).astype(bf16)
    b4 = _pad2(params["b4"], 1, Dp).astype(f32)

    # ---- VMEM budget from actual tile arithmetic (double-buffered I/O +
    # resident weights + f32 intermediates), clamped to per-generation bounds.
    w_bytes = 2 * ((Dp * Hp + Hp * 2 * Zp + Zp * Hp + Hp * Dp) * 2
                   + (Hp + 2 * Zp + Hp + Dp) * 4)
    io_bytes = 2 * (TB * Dp * 2 + TB * Zp * 4 + TB * Wout * 4)
    tmp_bytes = TB * (2 * Hp + 2 * Zp) * 4
    vmem_limit = int(max(16 << 20,
                         min(64 << 20, 2 * (w_bytes + io_bytes + tmp_bytes))))

    def batch_spec(cols):
        return pl.BlockSpec((TB, cols), lambda i: (i, 0))

    def resident_spec(shape):
        return pl.BlockSpec(shape, lambda i: (0, 0))

    grid_spec = pltpu.PrefetchScalarGridSpec(
        num_scalar_prefetch=0,
        grid=(nb,),
        in_specs=[
            batch_spec(Dp),                                         # x
            batch_spec(Zp),                                         # eps
            resident_spec((Dp, Hp)), resident_spec((1, Hp)),        # w1, b1
            resident_spec((Hp, 2 * Zp)), resident_spec((1, 2 * Zp)),  # wh, bh
            resident_spec((Zp, Hp)), resident_spec((1, Hp)),        # w3, b3
            resident_spec((Hp, Dp)), resident_spec((1, Dp)),        # w4, b4
        ],
        out_specs=pl.BlockSpec((TB, Wout), lambda i: (i, 0)),
    )

    out = pl.pallas_call(
        functools.partial(_vae_kernel, d_pad=Dp, z_pad=Zp),
        out_shape=jax.ShapeDtypeStruct((Bp, Wout), f32),
        grid_spec=grid_spec,
        compiler_params=pltpu.CompilerParams(
            dimension_semantics=("parallel",),
            vmem_limit_bytes=vmem_limit,
        ),
    )(xp, ep, w1, b1, wh, bh, w3, b3, w4, b4)

    # ---- unpack the lane-dense slab ----
    x_hat = out[:B, 0:D]
    mu = out[:B, Dp:Dp + Z]
    logvar = out[:B, Dp + Zp:Dp + Zp + Z]
    z = out[:B, Dp + 2 * Zp:Dp + 2 * Zp + Z]
    return x_hat, mu, logvar, z


# ----------------------------------------------------------------------------
# Deterministic parameter init (mimics nn.Linear uniform(-1/sqrt(fan_in), ..)),
# weights stored as [in, out] (i.e. PyTorch weight.T), biases as [1, out].
# ----------------------------------------------------------------------------
def init_params(key, input_dim, hidden_dim, latent_dim):
    def linear(k, fan_in, fan_out):
        kw, kb = jax.random.split(k)
        bound = 1.0 / jnp.sqrt(fan_in)
        w = jax.random.uniform(kw, (fan_in, fan_out), jnp.float32, -bound, bound)
        b = jax.random.uniform(kb, (1, fan_out), jnp.float32, -bound, bound)
        return w, b

    k1, k21, k22, k3, k4 = jax.random.split(key, 5)
    w1, b1 = linear(k1, input_dim, hidden_dim)
    w21, b21 = linear(k21, hidden_dim, latent_dim)
    w22, b22 = linear(k22, hidden_dim, latent_dim)
    w3, b3 = linear(k3, latent_dim, hidden_dim)
    w4, b4 = linear(k4, hidden_dim, input_dim)
    return dict(w1=w1, b1=b1, w21=w21, b21=b21, w22=w22, b22=b22,
                w3=w3, b3=b3, w4=w4, b4=b4)


def vae_forward_ref(x, eps, p):
    """Plain-JAX reference with the same bf16-MXU / f32-elementwise policy."""
    bf16 = jnp.bfloat16

    def mm(a, w):
        return jnp.dot(a.astype(bf16), w.astype(bf16),
                       preferred_element_type=jnp.float32)

    h = jnp.maximum(mm(x, p["w1"]) + p["b1"], 0.0)
    mu = mm(h, p["w21"]) + p["b21"]
    logvar = mm(h, p["w22"]) + p["b22"]
    z = mu + eps * jnp.exp(0.5 * logvar)
    h2 = jnp.maximum(mm(z, p["w3"]) + p["b3"], 0.0)
    x_hat = mm(h2, p["w4"]) + p["b4"]
    return x_hat, mu, logvar, z


if __name__ == "__main__":
    input_dim, hidden_dim, latent_dim = 16, 32, 8
    batch = 8

    key = jax.random.PRNGKey(0)
    k_param, k_x, k_eps = jax.random.split(key, 3)

    params = init_params(k_param, input_dim, hidden_dim, latent_dim)
    x = jax.random.normal(k_x, (batch, input_dim), jnp.float32)
    eps = jax.random.normal(k_eps, (batch, latent_dim), jnp.float32)

    outs = vae_forward(x, eps, params)
    jax.block_until_ready(outs)

    refs = vae_forward_ref(x, eps, params)
    for got, want in zip(outs, refs):
        assert got.shape == want.shape, (got.shape, want.shape)
        assert jnp.allclose(got, want, atol=3e-2, rtol=3e-2), "mismatch vs reference"

    # also exercise the multi-tile batch grid path (padding + blocking)
    k_x2, k_e2 = jax.random.split(jax.random.PRNGKey(1))
    x2 = jax.random.normal(k_x2, (300, input_dim), jnp.float32)
    eps2 = jax.random.normal(k_e2, (300, latent_dim), jnp.float32)
    outs2 = vae_forward(x2, eps2, params, block_b=128)
    jax.block_until_ready(outs2)
    refs2 = vae_forward_ref(x2, eps2, params)
    for got, want in zip(outs2, refs2):
        assert got.shape == want.shape, (got.shape, want.shape)
        assert jnp.allclose(got, want, atol=3e-2, rtol=3e-2), "mismatch vs reference (batched)"

    print("KERNEL_OK")
</pallas_src>

<mosaic_0001>
module attributes {stable_mosaic.version = 11 : i64} {
  func.func @_vae_kernel(%arg0: i32, %arg1: memref<8x128xbf16, #tpu.memory_space<vmem>>, %arg2: memref<8x128xf32, #tpu.memory_space<vmem>>, %arg3: memref<128x128xbf16, #tpu.memory_space<vmem>>, %arg4: memref<1x128xf32, #tpu.memory_space<vmem>>, %arg5: memref<128x256xbf16, #tpu.memory_space<vmem>>, %arg6: memref<1x256xf32, #tpu.memory_space<vmem>>, %arg7: memref<128x128xbf16, #tpu.memory_space<vmem>>, %arg8: memref<1x128xf32, #tpu.memory_space<vmem>>, %arg9: memref<128x128xbf16, #tpu.memory_space<vmem>>, %arg10: memref<1x128xf32, #tpu.memory_space<vmem>>, %arg11: memref<8x512xf32, #tpu.memory_space<vmem>>) attributes {dimension_semantics = [#tpu.dimension_semantics<parallel>], iteration_bounds = array<i64: 1>, scalar_prefetch = 0 : i64, scratch_operands = 0 : i64, tpu.core_type = #tpu.core_type<tc>, window_params = [{transform_indices = @transform_0, window_bounds = array<i64: 8, 128>}, {transform_indices = @transform_1, window_bounds = array<i64: 8, 128>}, {pipeline_mode = #tpu.pipeline_mode<synchronous>, transform_indices = @transform_2, window_bounds = array<i64: 128, 128>}, {pipeline_mode = #tpu.pipeline_mode<synchronous>, transform_indices = @transform_3, window_bounds = array<i64: 1, 128>}, {pipeline_mode = #tpu.pipeline_mode<synchronous>, transform_indices = @transform_4, window_bounds = array<i64: 128, 256>}, {pipeline_mode = #tpu.pipeline_mode<synchronous>, transform_indices = @transform_5, window_bounds = array<i64: 1, 256>}, {pipeline_mode = #tpu.pipeline_mode<synchronous>, transform_indices = @transform_6, window_bounds = array<i64: 128, 128>}, {pipeline_mode = #tpu.pipeline_mode<synchronous>, transform_indices = @transform_7, window_bounds = array<i64: 1, 128>}, {pipeline_mode = #tpu.pipeline_mode<synchronous>, transform_indices = @transform_8, window_bounds = array<i64: 128, 128>}, {pipeline_mode = #tpu.pipeline_mode<synchronous>, transform_indices = @transform_9, window_bounds = array<i64: 1, 128>}, {transform_indices = @transform_10, window_bounds = array<i64: 8, 512>}]} {
    %c0 = arith.constant 0 : index
    %c0_0 = arith.constant 0 : index
    %0 = vector.load %arg1[%c0, %c0_0] : memref<8x128xbf16, #tpu.memory_space<vmem>>, vector<8x128xbf16>
    %c0_1 = arith.constant 0 : index
    %c0_2 = arith.constant 0 : index
    %1 = vector.load %arg3[%c0_1, %c0_2] : memref<128x128xbf16, #tpu.memory_space<vmem>>, vector<128x128xbf16>
    %cst = arith.constant dense<0.000000e+00> : vector<8x128xf32>
    %2 = tpu.matmul %0, %1, %cst {dimension_numbers = #tpu.dot_dimension_numbers<[1], [0], [0], [1], [0, 0, 1, 1], [], []>} : vector<8x128xbf16>, vector<128x128xbf16>, vector<8x128xf32> -> vector<8x128xf32>
    %c0_3 = arith.constant 0 : index
    %c0_4 = arith.constant 0 : index
    %3 = vector.load %arg4[%c0_3, %c0_4] : memref<1x128xf32, #tpu.memory_space<vmem>>, vector<1x128xf32>
    %4 = vector.broadcast %3 : vector<1x128xf32> to vector<8x128xf32>
    %5 = arith.addf %2, %4 : vector<8x128xf32>
    %cst_5 = arith.constant 0.000000e+00 : f32
    %6 = vector.broadcast %cst_5 : f32 to vector<8x128xf32>
    %7 = arith.maximumf %5, %6 : vector<8x128xf32>
    %8 = arith.truncf %7 : vector<8x128xf32> to vector<8x128xbf16>
    %c0_6 = arith.constant 0 : index
    %c0_7 = arith.constant 0 : index
    %9 = vector.load %arg5[%c0_6, %c0_7] : memref<128x256xbf16, #tpu.memory_space<vmem>>, vector<128x256xbf16>
    %cst_8 = arith.constant dense<0.000000e+00> : vector<8x256xf32>
    %10 = tpu.matmul %8, %9, %cst_8 {dimension_numbers = #tpu.dot_dimension_numbers<[1], [0], [0], [1], [0, 0, 1, 1], [], []>} : vector<8x128xbf16>, vector<128x256xbf16>, vector<8x256xf32> -> vector<8x256xf32>
    %c0_9 = arith.constant 0 : index
    %c0_10 = arith.constant 0 : index
    %11 = vector.load %arg6[%c0_9, %c0_10] : memref<1x256xf32, #tpu.memory_space<vmem>>, vector<1x256xf32>
    %12 = vector.broadcast %11 : vector<1x256xf32> to vector<8x256xf32>
    %13 = arith.addf %10, %12 : vector<8x256xf32>
    %14 = vector.extract_strided_slice %13 {offsets = [0, 0], sizes = [8, 128], strides = [1, 1]} : vector<8x256xf32> to vector<8x128xf32>
    %15 = vector.extract_strided_slice %13 {offsets = [0, 128], sizes = [8, 128], strides = [1, 1]} : vector<8x256xf32> to vector<8x128xf32>
    %cst_11 = arith.constant 5.000000e-01 : f32
    %16 = vector.broadcast %cst_11 : f32 to vector<8x128xf32>
    %17 = arith.mulf %16, %15 : vector<8x128xf32>
    %18 = math.exp %17 : vector<8x128xf32>
    %c0_12 = arith.constant 0 : index
    %c0_13 = arith.constant 0 : index
    %19 = vector.load %arg2[%c0_12, %c0_13] : memref<8x128xf32, #tpu.memory_space<vmem>>, vector<8x128xf32>
    %20 = arith.mulf %19, %18 : vector<8x128xf32>
    %21 = arith.addf %14, %20 : vector<8x128xf32>
    %22 = arith.truncf %21 : vector<8x128xf32> to vector<8x128xbf16>
    %c0_14 = arith.constant 0 : index
    %c0_15 = arith.constant 0 : index
    %23 = vector.load %arg7[%c0_14, %c0_15] : memref<128x128xbf16, #tpu.memory_space<vmem>>, vector<128x128xbf16>
    %cst_16 = arith.constant dense<0.000000e+00> : vector<8x128xf32>
    %24 = tpu.matmul %22, %23, %cst_16 {dimension_numbers = #tpu.dot_dimension_numbers<[1], [0], [0], [1], [0, 0, 1, 1], [], []>} : vector<8x128xbf16>, vector<128x128xbf16>, vector<8x128xf32> -> vector<8x128xf32>
    %c0_17 = arith.constant 0 : index
    %c0_18 = arith.constant 0 : index
    %25 = vector.load %arg8[%c0_17, %c0_18] : memref<1x128xf32, #tpu.memory_space<vmem>>, vector<1x128xf32>
    %26 = vector.broadcast %25 : vector<1x128xf32> to vector<8x128xf32>
    %27 = arith.addf %24, %26 : vector<8x128xf32>
    %cst_19 = arith.constant 0.000000e+00 : f32
    %28 = vector.broadcast %cst_19 : f32 to vector<8x128xf32>
    %29 = arith.maximumf %27, %28 : vector<8x128xf32>
    %30 = arith.truncf %29 : vector<8x128xf32> to vector<8x128xbf16>
    %c0_20 = arith.constant 0 : index
    %c0_21 = arith.constant 0 : index
    %31 = vector.load %arg9[%c0_20, %c0_21] : memref<128x128xbf16, #tpu.memory_space<vmem>>, vector<128x128xbf16>
    %cst_22 = arith.constant dense<0.000000e+00> : vector<8x128xf32>
    %32 = tpu.matmul %30, %31, %cst_22 {dimension_numbers = #tpu.dot_dimension_numbers<[1], [0], [0], [1], [0, 0, 1, 1], [], []>} : vector<8x128xbf16>, vector<128x128xbf16>, vector<8x128xf32> -> vector<8x128xf32>
    %c0_23 = arith.constant 0 : index
    %c0_24 = arith.constant 0 : index
    %33 = vector.load %arg10[%c0_23, %c0_24] : memref<1x128xf32, #tpu.memory_space<vmem>>, vector<1x128xf32>
    %34 = vector.broadcast %33 : vector<1x128xf32> to vector<8x128xf32>
    %35 = arith.addf %32, %34 : vector<8x128xf32>
    %c0_25 = arith.constant 0 : index
    %c0_26 = arith.constant 0 : index
    %36 = vector.load %arg11[%c0_25, %c0_26] : memref<8x512xf32, #tpu.memory_space<vmem>>, vector<8x128xf32>
    tpu.vector_store %arg11[%c0_25, %c0_26], %35 {strides = array<i32>} : memref<8x512xf32, #tpu.memory_space<vmem>>, vector<8x128xf32>,
    %c0_27 = arith.constant 0 : index
    %c128 = arith.constant 128 : index
    %37 = vector.load %arg11[%c0_27, %c128] : memref<8x512xf32, #tpu.memory_space<vmem>>, vector<8x128xf32>
    tpu.vector_store %arg11[%c0_27, %c128], %14 {strides = array<i32>} : memref<8x512xf32, #tpu.memory_space<vmem>>, vector<8x128xf32>,
    %c0_28 = arith.constant 0 : index
    %c256 = arith.constant 256 : index
    %38 = vector.load %arg11[%c0_28, %c256] : memref<8x512xf32, #tpu.memory_space<vmem>>, vector<8x128xf32>
    tpu.vector_store %arg11[%c0_28, %c256], %15 {strides = array<i32>} : memref<8x512xf32, #tpu.memory_space<vmem>>, vector<8x128xf32>,
    %c0_29 = arith.constant 0 : index
    %c384 = arith.constant 384 : index
    %39 = vector.load %arg11[%c0_29, %c384] : memref<8x512xf32, #tpu.memory_space<vmem>>, vector<8x128xf32>
    tpu.vector_store %arg11[%c0_29, %c384], %21 {strides = array<i32>} : memref<8x512xf32, #tpu.memory_space<vmem>>, vector<8x128xf32>,
    return
  }
  func.func @transform_0(%arg0: i32) -> (i32, i32) {
    %c0_i32 = arith.constant 0 : i32
    %c0_i32_0 = arith.constant 0 : i32
    return %arg0, %c0_i32 : i32, i32
  }
  func.func @transform_1(%arg0: i32) -> (i32, i32) {
    %c0_i32 = arith.constant 0 : i32
    %c0_i32_0 = arith.constant 0 : i32
    return %arg0, %c0_i32 : i32, i32
  }
  func.func @transform_2(%arg0: i32) -> (i32, i32) {
    %c0_i32 = arith.constant 0 : i32
    %c0_i32_0 = arith.constant 0 : i32
    %c0_i32_1 = arith.constant 0 : i32
    return %c0_i32, %c0_i32_0 : i32, i32
  }
  func.func @transform_3(%arg0: i32) -> (i32, i32) {
    %c0_i32 = arith.constant 0 : i32
    %c0_i32_0 = arith.constant 0 : i32
    %c0_i32_1 = arith.constant 0 : i32
    return %c0_i32, %c0_i32_0 : i32, i32
  }
  func.func @transform_4(%arg0: i32) -> (i32, i32) {
    %c0_i32 = arith.constant 0 : i32
    %c0_i32_0 = arith.constant 0 : i32
    %c0_i32_1 = arith.constant 0 : i32
    return %c0_i32, %c0_i32_0 : i32, i32
  }
  func.func @transform_5(%arg0: i32) -> (i32, i32) {
    %c0_i32 = arith.constant 0 : i32
    %c0_i32_0 = arith.constant 0 : i32
    %c0_i32_1 = arith.constant 0 : i32
    return %c0_i32, %c0_i32_0 : i32, i32
  }
  func.func @transform_6(%arg0: i32) -> (i32, i32) {
    %c0_i32 = arith.constant 0 : i32
    %c0_i32_0 = arith.constant 0 : i32
    %c0_i32_1 = arith.constant 0 : i32
    return %c0_i32, %c0_i32_0 : i32, i32
  }
  func.func @transform_7(%arg0: i32) -> (i32, i32) {
    %c0_i32 = arith.constant 0 : i32
    %c0_i32_0 = arith.constant 0 : i32
    %c0_i32_1 = arith.constant 0 : i32
    return %c0_i32, %c0_i32_0 : i32, i32
  }
  func.func @transform_8(%arg0: i32) -> (i32, i32) {
    %c0_i32 = arith.constant 0 : i32
    %c0_i32_0 = arith.constant 0 : i32
    %c0_i32_1 = arith.constant 0 : i32
    return %c0_i32, %c0_i32_0 : i32, i32
  }
  func.func @transform_9(%arg0: i32) -> (i32, i32) {
    %c0_i32 = arith.constant 0 : i32
    %c0_i32_0 = arith.constant 0 : i32
    %c0_i32_1 = arith.constant 0 : i32
    return %c0_i32, %c0_i32_0 : i32, i32
  }
  func.func @transform_10(%arg0: i32) -> (i32, i32) {
    %c0_i32 = arith.constant 0 : i32
    %c0_i32_0 = arith.constant 0 : i32
    return %arg0, %c0_i32 : i32, i32
  }
}

</mosaic_0001>

<bundles_post_ra>
// kernel: vae_forward.1
= control target key start
LH: loop header
LB: loop body
LE: loop exit
PB: predicated region body
PF: predicated region fallthrough
CT: control target
= control target key end

     0   :  { %v721_v0 = vmov 0.0   ;;  %vm722_vm0 = vmmov 0   ;;  %v723_v26 = vmov 0   ;;  %v168_v49 = vlaneseq  ;;  %s959_s2 = inlined_call_operand.vmem [shape: bf16[128,128], index: 2, kind: input, shape index: {}]   ;;  %s960_s4 = inlined_call_operand.vmem [shape: bf16[128,256], index: 4, kind: input, shape index: {}]   ;;  %s961_s0 = inlined_call_operand.vmem [shape: bf16[8,128], index: 0, kind: input, shape index: {}]   ;;  %s962_s6 = inlined_call_operand.vmem [shape: bf16[128,128], index: 6, kind: input, shape index: {}]   ;;  %s963_s3 = inlined_call_operand.vmem [shape: f32[1,128], index: 3, kind: input, shape index: {}]   ;;  %s964_s8 = inlined_call_operand.vmem [shape: bf16[128,128], index: 8, kind: input, shape index: {}]   ;;  %s965_s5 = inlined_call_operand.vmem [shape: f32[1,256], index: 5, kind: input, shape index: {}]   ;;  %s966_s10 = inlined_call_operand.vmem [shape: f32[8,512], index: 10, kind: output, shape index: {}]   ;;  %s967_s1 = inlined_call_operand.vmem [shape: f32[8,128], index: 1, kind: input, shape index: {}]   ;;  %s968_s7 = inlined_call_operand.vmem [shape: f32[1,128], index: 7, kind: input, shape index: {}]   ;;  %s969_s9 = inlined_call_operand.vmem [shape: f32[1,128], index: 9, kind: input, shape index: {}]  }
   0x1   :  { %608 = vmatprep.subr.bf16.mxu0 %v721_v0  ;;  %v671_v1 = vld [vmem:[%s959_s2] sm:$0xff]   ;;  %624 = vmatprep.mubr.msk.bf16.mxu0 %vm722_vm0, %v721_v0  ;;  %v672_v2 = vld [vmem:[%s959_s2 + $0x8] sm:$0xff]   ;;  %v673_v3 = vld [vmem:[%s959_s2 + $0x10] sm:$0xff]  }
   0x2   :  { %609 = vmatpush3.bf16.msra.mxu0 %v671_v1  ;;  %v679_v4 = vld [vmem:[%s960_s4 + $0x4] ss:$8 sps:$4 sm:$0xff]   ;;  %v681_v5 = vld [vmem:[%s960_s4] ss:$8 sps:$4 sm:$0xff]   ;;  %v674_v6 = vld [vmem:[%s959_s2 + $0x18] sm:$0xff]   ;;  %290 = vmatprep.mubr.bf16.mxu1 %v723_v26  ;;  %v169_v50 = vshrl.u32 %v168_v49, 7 }
   0x3   :  { %610 = vmatprep.subr.bf16.mxu0 %v721_v0  ;;  %v682_v7 = vld [vmem:[%s960_s4 + $0x14] ss:$8 sps:$4 sm:$0xff]   ;;  %258 = vmatprep.subr.bf16.mxu1 %v679_v4  ;;  %v684_v8 = vld [vmem:[%s960_s4 + $0x10] ss:$8 sps:$4 sm:$0xff]   ;;  %v685_v9 = vld [vmem:[%s960_s4 + $0x24] ss:$8 sps:$4 sm:$0xff]  }
   0x4   :  { %259 = vmatpush1.bf16.msra.mxu1 %v681_v5  ;;  %v675_v10 = vld [vmem:[%s959_s2 + $0x20] sm:$0xff]   ;;  %v688_v12 = vld [vmem:[%s960_s4 + $0x34] ss:$8 sps:$4 sm:$0xff]   ;;  %v676_v13 = vld [vmem:[%s959_s2 + $0x28] sm:$0xff]   ;;  %v170_v51 = vsub.s32 0, %v169_v50  ;;  %v174_v53 = vsub.s32 1, %v169_v50 }
   0x5   :  { %260 = vmatprep.subr.bf16.mxu1 %v682_v7  ;;  %v687_v11 = vld [vmem:[%s960_s4 + $0x20] ss:$8 sps:$4 sm:$0xff]   ;;  %v690_v14 = vld [vmem:[%s960_s4 + $0x30] ss:$8 sps:$4 sm:$0xff]   ;;  %v691_v15 = vld [vmem:[%s960_s4 + $0x44] ss:$8 sps:$4 sm:$0xff]  }
   0x6   :  { %611 = vmatpush3.bf16.msra.mxu0 %v672_v2  ;;  %v677_v16 = vld [vmem:[%s959_s2 + $0x30] sm:$0xff]   ;;  %v693_v17 = vld [vmem:[%s960_s4 + $0x40] ss:$8 sps:$4 sm:$0xff]   ;;  %v678_v19 = vld [vmem:[%s959_s2 + $0x38] sm:$0xff]  }
   0x7   :  { %612 = vmatprep.subr.bf16.mxu0 %v721_v0  ;;  %v694_v18 = vld [vmem:[%s960_s4 + $0x54] ss:$8 sps:$4 sm:$0xff]   ;;  %v696_v20 = vld [vmem:[%s960_s4 + $0x50] ss:$8 sps:$4 sm:$0xff]   ;;  %v697_v21 = vld [vmem:[%s960_s4 + $0x64] ss:$8 sps:$4 sm:$0xff]  }
   0x8   :  { %261 = vmatpush1.bf16.msra.mxu1 %v684_v8  ;;  %v36_v22 = vld [vmem:[%s961_s0] sm:$0xf]  ;;  %v700_v24 = vld [vmem:[%s960_s4 + $0x74] ss:$8 sps:$4 sm:$0xff]   ;;  %v702_v25 = vld [vmem:[%s960_s4 + $0x70] ss:$8 sps:$4 sm:$0xff]  }
   0x9   :  { %262 = vmatprep.subr.bf16.mxu1 %v685_v9  ;;  %v699_v23 = vld [vmem:[%s960_s4 + $0x60] ss:$8 sps:$4 sm:$0xff]   ;;  %v705_v37 = vld [vmem:[%s962_s6 + $0x10] sm:$0xff]   ;;  %v706_v38 = vld [vmem:[%s962_s6 + $0x18] sm:$0xff]  }
   0xa   :  { %613 = vmatpush3.bf16.msra.mxu0 %v673_v3  ;;  %v703_v27 = vld [vmem:[%s962_s6] sm:$0xff]   ;;  %v704_v28 = vld [vmem:[%s962_s6 + $0x8] sm:$0xff]   ;;  %v709_v41 = vld [vmem:[%s962_s6 + $0x30] sm:$0xff]  }
   0xb   :  { %614 = vmatprep.subr.bf16.mxu0 %v721_v0  ;;  %v538_v29 = vld [vmem:[%s963_s3] ss:$0 sm:$0xff]  ;;  %v708_v40 = vld [vmem:[%s962_s6 + $0x28] sm:$0xff]   ;;  %v710_v42 = vld [vmem:[%s962_s6 + $0x38] sm:$0xff]  }
   0xc   :  { %263 = vmatpush1.bf16.msra.mxu1 %v687_v11  ;;  %v707_v39 = vld [vmem:[%s962_s6 + $0x20] sm:$0xff]   ;;  %v712_v44 = vld [vmem:[%s964_s8 + $0x8] sm:$0xff]   ;;  %v713_v45 = vld [vmem:[%s964_s8 + $0x10] sm:$0xff]  }
   0xd   :  { %264 = vmatprep.subr.bf16.mxu1 %v688_v12  ;;  %v711_v43 = vld [vmem:[%s964_s8] sm:$0xff]   ;;  %v714_v46 = vld [vmem:[%s964_s8 + $0x18] sm:$0xff]   ;;  %v716_v48 = vld [vmem:[%s964_s8 + $0x28] sm:$0xff]  }
   0xe   :  { %615 = vmatpush3.bf16.msra.mxu0 %v674_v6  ;;  %v715_v47 = vld [vmem:[%s964_s8 + $0x20] sm:$0xff]   ;;  %v717_v6 = vld [vmem:[%s964_s8 + $0x30] sm:$0xff]   ;;  %v718_v7 = vld [vmem:[%s964_s8 + $0x38] sm:$0xff]  }
   0xf   :  { %616 = vmatprep.subr.bf16.mxu0 %v721_v0  ;;  %v166_v52 = vld [vmem:[%s965_s5] sm:$0x3] }
  0x10   :  { %265 = vmatpush1.bf16.msra.mxu1 %v690_v14  ;;  %v171_v54 = vrot.slane %v166_v52, %v170_v51  ;;  %v175_v55 = vrot.slane %v166_v52, %v174_v53  ;;  %v302_v1 = vld [vmem:[%s967_s1] sm:$0xff] }
  0x11   :  { %266 = vmatprep.subr.bf16.mxu1 %v691_v15  ;;  %v563_v8 = vld [vmem:[%s968_s7] ss:$0 sm:$0xff] }
  0x12   :  { %617 = vmatpush3.bf16.msra.mxu0 %v675_v10 }
  0x13   :  { %618 = vmatprep.subr.bf16.mxu0 %v721_v0 }
  0x14   :  { %267 = vmatpush1.bf16.msra.mxu1 %v693_v17 }
  0x15   :  { %268 = vmatprep.subr.bf16.mxu1 %v694_v18 }
  0x16   :  { %619 = vmatpush3.bf16.msra.mxu0 %v676_v13 }
  0x17   :  { %620 = vmatprep.subr.bf16.mxu0 %v721_v0 }
  0x18   :  { %269 = vmatpush1.bf16.msra.mxu1 %v696_v20 }
  0x19   :  { %270 = vmatprep.subr.bf16.mxu1 %v697_v21 }
  0x1a   :  { %621 = vmatpush3.bf16.msra.mxu0 %v677_v16 }
  0x1b   :  { %622 = vmatprep.subr.bf16.mxu0 %v721_v0 }
  0x1c   :  { %271 = vmatpush1.bf16.msra.mxu1 %v699_v23 }
  0x1d   :  { %272 = vmatprep.subr.bf16.mxu1 %v700_v24 }
  0x1e   :  { %623 = vmatpush3.bf16.msra.mxu0 %v678_v19 }
  0x1f   :  { %628 = vmatprep.subr.bf16.mxu0 %v721_v0 }
  0x20   :  { %273 = vmatpush1.bf16.msra.mxu1 %v702_v25 }
  0x21   :  { %625 = vmatmul.mubr.bf16.vlgmr.msra.gmra.mrb[0].mxu0 %v36_v22  ;;  %648 = vmatprep.subr.bf16.mxu1 %v721_v0 }
  0x22   :  { %644 = vmatprep.mubr.msk.bf16.mxu0 %vm722_vm0, %v721_v0  ;;  %629 = vmatpush3.bf16.msra.mxu0 %v703_v27 }
  0x23   :  { %630 = vmatprep.subr.bf16.mxu0 %v721_v0 }
  0x26   :  { %631 = vmatpush3.bf16.msra.mxu0 %v704_v28 }
  0x27   :  { %632 = vmatprep.subr.bf16.mxu0 %v721_v0 }
  0x2a   :  { %633 = vmatpush3.bf16.msra.mxu0 %v705_v37 }
  0x2b   :  { %634 = vmatprep.subr.bf16.mxu0 %v721_v0 }
  0x2e   :  { %635 = vmatpush3.bf16.msra.mxu0 %v706_v38 }
  0x2f   :  { %636 = vmatprep.subr.bf16.mxu0 %v721_v0 }
  0x32   :  { %637 = vmatpush3.bf16.msra.mxu0 %v707_v39 }
  0x33   :  { %638 = vmatprep.subr.bf16.mxu0 %v721_v0 }
  0x36   :  { %639 = vmatpush3.bf16.msra.mxu0 %v708_v40 }
  0x37   :  { %640 = vmatprep.subr.bf16.mxu0 %v721_v0 }
  0x3a   :  { %641 = vmatpush3.bf16.msra.mxu0 %v709_v41 }
  0x3b   :  { %642 = vmatprep.subr.bf16.mxu0 %v721_v0 }
  0x3e   :  { %643 = vmatpush3.bf16.msra.mxu0 %v710_v42 }
  0xf4   :  { %v142_v30 = vpop.f32.mrb[0].mxu0 }
  0xf5   :  { %v143_v31 = vadd.f32 %v538_v29, %v142_v30  ;;  %v626_v32 = vpop.f32.mrb[1].mxu0 }
  0xf6   :  { %v145_v33 = vpop.f32.mrb[2].mxu0 }
  0xf7   :  { %v148_v34 = vmax.f32 %v143_v31, 0.0  ;;  %v627_v35 = vpop.f32.mrb[3].mxu0 }
  0xf9   :  { %v149_v36 = vpack.c.bf16 %v148_v34, %v148_v34 }
  0xfb   :  { %291 = vmatmul.mubr.bf16.vlgmr.msra.gmra.mrb[0].mxu1 %v149_v36 }
  0xfc   :  { %664 = vmatprep.mubr.msk.bf16.mxu1 %vm722_vm0, %v721_v0  ;;  %649 = vmatpush3.bf16.msra.mxu1 %v711_v43 }
  0xfd   :  { %650 = vmatprep.subr.bf16.mxu1 %v721_v0 }
 0x100   :  { %651 = vmatpush3.bf16.msra.mxu1 %v712_v44 }
 0x101   :  { %652 = vmatprep.subr.bf16.mxu1 %v721_v0 }
 0x104   :  { %653 = vmatpush3.bf16.msra.mxu1 %v713_v45 }
 0x105   :  { %654 = vmatprep.subr.bf16.mxu1 %v721_v0 }
 0x108   :  { %655 = vmatpush3.bf16.msra.mxu1 %v714_v46 }
 0x109   :  { %656 = vmatprep.subr.bf16.mxu1 %v721_v0 }
 0x10c   :  { %657 = vmatpush3.bf16.msra.mxu1 %v715_v47 }
 0x10d   :  { %658 = vmatprep.subr.bf16.mxu1 %v721_v0 }
 0x110   :  { %659 = vmatpush3.bf16.msra.mxu1 %v716_v48 }
 0x111   :  { %660 = vmatprep.subr.bf16.mxu1 %v721_v0 }
 0x114   :  { %661 = vmatpush3.bf16.msra.mxu1 %v717_v6 }
 0x115   :  { %662 = vmatprep.subr.bf16.mxu1 %v721_v0  ;;  %v572_v0 = vld [vmem:[%s969_s9] ss:$0 sm:$0xff] }
 0x118   :  { %663 = vmatpush3.bf16.msra.mxu1 %v718_v7 }
 0x1ce   :  { %v292_v56 = vpop.f32.mrb[0].mxu1 }
 0x1cf   :  { %v293_v57 = vadd.f32 %v292_v56, %v171_v54  ;;  %v294_v58 = vpop.f32.mrb[1].mxu1 }
 0x1d0   :  { %v295_v59 = vadd.f32 %v294_v58, %v175_v55  ;;  %v296_v60 = vpop.f32.mrb[2].mxu1 }
 0x1d1   :  { %531 = vst [vmem:[%s966_s10 + $0x8] sm:$0xff] %v293_v57  ;;  %v297_v61 = vpop.f32.mrb[3].mxu1 }
 0x1d2   :  { %v299_v62 = vmul.f32 0.5, %v295_v59  ;;  %532 = vst [vmem:[%s966_s10 + $0x10] sm:$0xff] %v295_v59 }
 0x1d4   :  { %v300_v63 = vmul.f32 1.442695, %v299_v62 }
 0x1d6   :  { %719 = vpow2.f32 %v300_v63 }
 0x1e0   :  { %v720_v2 = vpop.eup %719 }
 0x1e1   :  { %v303_v3 = vmul.f32 %v720_v2, %v302_v1 }
 0x1e3   :  { %v304_v4 = vadd.f32 %v303_v3, %v293_v57 }
 0x1e5   :  { %v305_v5 = vpack.c.bf16 %v304_v4, %v304_v4  ;;  %533 = vst [vmem:[%s966_s10 + $0x18] sm:$0xff] %v304_v4 }
 0x1e7   :  { %645 = vmatmul.mubr.bf16.vlgmr.msra.gmra.mrb[4].mxu0 %v305_v5 }
 0x2ba   :  { %v411_v9 = vpop.f32.mrb[4].mxu0 }
 0x2bb   :  { %v412_v10 = vadd.f32 %v563_v8, %v411_v9  ;;  %v646_v11 = vpop.f32.mrb[5].mxu0 }
 0x2bc   :  { %v414_v12 = vpop.f32.mrb[6].mxu0 }
 0x2bd   :  { %v417_v13 = vmax.f32 %v412_v10, 0.0  ;;  %v647_v14 = vpop.f32.mrb[7].mxu0 }
 0x2bf   :  { %v418_v15 = vpack.c.bf16 %v417_v13, %v417_v13 }
 0x2c1   :  { %665 = vmatmul.mubr.bf16.vlgmr.msra.gmra.mrb[4].mxu1 %v418_v15 }
 0x394   :  { %v524_v16 = vpop.f32.mrb[4].mxu1 }
 0x395   :  { %v525_v17 = vadd.f32 %v572_v0, %v524_v16  ;;  %v666_v18 = vpop.f32.mrb[5].mxu1 }
 0x396   :  { %v527_v19 = vpop.f32.mrb[6].mxu1 }
 0x397   :  { %530 = vst [vmem:[%s966_s10] sm:$0xff] %v525_v17  ;;  %v667_v20 = vpop.f32.mrb[7].mxu1 }

</bundles_post_ra>
